<compile_context>
chip_gen: v7x
topology: tpu7x:2x2x1
jax: 0.10.0
libtpu: 0.0.40
codegen_flags: <defaults>
</compile_context>

<pallas_src>
from math import log, log1p
from functools import partial

import jax
import jax.numpy as jnp
from jax.experimental import pallas as pl
from jax.experimental.pallas import tpu as pltpu

_VMEM_LIMIT_BYTES = 48 << 20          # safe on v5e/v6e (128 MiB) and v7x (64 MiB)
_TARGET_TILE_BYTES = 8 << 20          # ~8 MiB per batched tile (x2 double-buffer)


# ----------------------------------------------------------------------------
# shared in-kernel helper: gammat (and logsumexp) from the (1, T) etat row
# ----------------------------------------------------------------------------
def _gammat_from_etat(etat, log_C, use_budget):
    m = jnp.max(etat, axis=-1, keepdims=True)                  # (1, 1)
    lse = m + jnp.log(jnp.sum(jnp.exp(etat - m), axis=-1, keepdims=True))
    if use_budget:
        return etat + log_C - lse, lse
    return etat, lse


# ----------------------------------------------------------------------------
# Kernel 1: all "distribution statistics" from etat in one pass (for the
# explicit getters get_eta / get_log_eta / get_gamma / get_log_gamma / ...).
# ----------------------------------------------------------------------------
def _stats_kernel(etat_ref, eta_ref, log_eta_ref, gamma_ref,
                  log_gamma_ref, log_1mg_ref, *, log_C, use_budget):
    etat = etat_ref[...]                                       # (1, T) f32
    m = jnp.max(etat, axis=-1, keepdims=True)
    e = jnp.exp(etat - m)
    s = jnp.sum(e, axis=-1, keepdims=True)
    lse = m + jnp.log(s)
    eta_ref[...] = e / s                                       # softmax
    log_eta_ref[...] = etat - lse                              # log_softmax
    gammat = etat + log_C - lse if use_budget else etat
    gamma_ref[...] = jax.nn.sigmoid(gammat)
    # logsigmoid(x) = min(x, 0) - log1p(exp(-|x|))   (numerically stable)
    common = -jnp.log1p(jnp.exp(-jnp.abs(gammat)))
    log_gamma_ref[...] = jnp.minimum(gammat, 0.0) + common
    log_1mg_ref[...] = jnp.minimum(-gammat, 0.0) + common


# ----------------------------------------------------------------------------
# Kernel 2 (fused + batch-tiled): log_pmf
#   alpha*log_gamma + (1-alpha)*log_1mgamma = alpha*gammat + log_1mgamma
#   => per-row reduce alpha*gammat, add the per-call constant sum(log_1mgamma).
#   etat: resident (1, T) block;  alpha tile: (TILE_B, T);  out tile: (TILE_B, 1)
# ----------------------------------------------------------------------------
def _log_pmf_kernel(etat_ref, alpha_ref, out_ref, *, log_C, use_budget):
    etat = etat_ref[...]                                       # (1, T)
    gammat, _ = _gammat_from_etat(etat, log_C, use_budget)
    log_1mg = jnp.minimum(-gammat, 0.0) - jnp.log1p(jnp.exp(-jnp.abs(gammat)))
    const = jnp.sum(log_1mg, axis=-1, keepdims=True)           # (1, 1)
    out_ref[...] = (jnp.sum(alpha_ref[...] * gammat, axis=-1, keepdims=True)
                    + const)                                   # (TILE_B, 1)


# ----------------------------------------------------------------------------
# Kernel 3 (fused + batch-tiled): concrete (relaxed Bernoulli) sample
#   u ~ Uniform[0,1) streamed in from the wrapper (jax.random.uniform).
#   temp == 1:  sigmoid(gammat + logit(u)) = u / (u + exp(-gammat)*(1-u))
#   else:       sigmoid((gammat + log u - log(1-u)) / temp)
# ----------------------------------------------------------------------------
def _concrete_kernel(etat_ref, u_ref, alpha_ref, *,
                     log_C, use_budget, temp, adversarial_mode):
    etat = etat_ref[...]                                       # (1, T)
    gammat, _ = _gammat_from_etat(etat, log_C, use_budget)
    u = jnp.clip(u_ref[...], 1e-6, 1.0 - 1e-6)                 # (TILE_B, T)

    if temp == 1.0:
        w = jnp.exp(-gammat)                                   # (1, T), once/tile
        a = u / (u + (1.0 - u) * w)
    else:
        z = gammat + jnp.log(u) - jnp.log(1.0 - u)
        a = jax.nn.sigmoid(z * (1.0 / temp))
    if adversarial_mode:
        a = 1.0 - a
    alpha_ref[...] = a


# ----------------------------------------------------------------------------
# Wrapper: a JAX/Pallas port of SelectionMechanism.
# ----------------------------------------------------------------------------
class SelectionMechanismPallas:
    def __init__(self, timesteps_per_trace, gamma_bar=0.5, adversarial_mode=True,
                 relaxation_temp=1.0, use_budget=True, seed=0):
        self.T = int(timesteps_per_trace)
        self.gamma_bar = gamma_bar
        self.adversarial_mode = adversarial_mode
        self.relaxation_temp = float(relaxation_temp)
        self.use_budget = use_budget
        if use_budget:
            self.log_C = log(timesteps_per_trace) + log(gamma_bar) - log1p(-gamma_bar)
        else:
            self.log_C = 0.0
        # deterministic parameter init: etat = 0.01 * randn((1, T))
        key = jax.random.PRNGKey(seed)
        self.etat = 0.01 * jax.random.normal(key, (1, self.T), dtype=jnp.float32)

        T = self.T
        vmem = pl.BlockSpec(memory_space=pltpu.MemorySpace.VMEM)
        self._stats_call = jax.jit(pl.pallas_call(
            partial(_stats_kernel, log_C=self.log_C, use_budget=self.use_budget),
            out_shape=tuple(jax.ShapeDtypeStruct((1, T), jnp.float32)
                            for _ in range(5)),
            in_specs=[vmem],
            out_specs=tuple(vmem for _ in range(5)),
            compiler_params=pltpu.CompilerParams(
                vmem_limit_bytes=_VMEM_LIMIT_BYTES),
        ))
        self._stats_cache = None
        self._log_pmf_calls = {}      # keyed by batch size
        self._concrete_calls = {}     # keyed by batch size

    # --- parameter update (invalidates cached stats) ---------------------
    def set_etat(self, etat):
        self.etat = jnp.asarray(etat, jnp.float32).reshape(1, self.T)
        self._stats_cache = None

    # --- batch tile sizing ------------------------------------------------
    def _tile_b(self, B):
        if B <= 8:
            return B                                   # block == full batch dim
        row_bytes = self.T * 4
        tb = max(8, (_TARGET_TILE_BYTES // max(row_bytes, 1)) // 8 * 8)
        return min(B, tb)                              # either == B or multiple of 8

    # --- statistics (explicit getters) ------------------------------------
    def stats(self):
        if self._stats_cache is None:
            eta, log_eta, gamma, log_gamma, log_1mg = self._stats_call(self.etat)
            self._stats_cache = dict(eta=eta, log_eta=log_eta, gamma=gamma,
                                     log_gamma=log_gamma, log_1mgamma=log_1mg)
        return self._stats_cache

    # --- log_pmf (fused, tiled, cached per batch size) ---------------------
    def _get_log_pmf_call(self, B):
        call = self._log_pmf_calls.get(B)
        if call is None:
            T = self.T
            tb = self._tile_b(B)
            call = jax.jit(pl.pallas_call(
                partial(_log_pmf_kernel, log_C=self.log_C,
                        use_budget=self.use_budget),
                grid=(pl.cdiv(B, tb),),
                in_specs=[pl.BlockSpec((1, T), lambda i: (0, 0)),      # resident etat
                          pl.BlockSpec((tb, T), lambda i: (i, 0))],    # alpha tile
                out_specs=pl.BlockSpec((tb, 1), lambda i: (i, 0)),
                out_shape=jax.ShapeDtypeStruct((B, 1), jnp.float32),
                compiler_params=pltpu.CompilerParams(
                    dimension_semantics=("parallel",),
                    vmem_limit_bytes=_VMEM_LIMIT_BYTES),
            ))
            self._log_pmf_calls[B] = call
        return call

    def log_pmf(self, alpha):
        # alpha: (B, 1, T) as in PyTorch -> flatten to (B, T)
        B = alpha.shape[0]
        alpha2d = jnp.asarray(alpha, jnp.float32).reshape(B, self.T)
        out = self._get_log_pmf_call(B)(self.etat, alpha2d)
        return out.reshape(B)                          # matches .sum(-1).squeeze(-1)

    # --- concrete sample (fused, tiled, noise streamed in, cached) ---------
    def _get_concrete_call(self, B):
        call = self._concrete_calls.get(B)
        if call is None:
            T = self.T
            tb = self._tile_b(B)
            call = jax.jit(pl.pallas_call(
                partial(_concrete_kernel, log_C=self.log_C,
                        use_budget=self.use_budget,
                        temp=self.relaxation_temp,
                        adversarial_mode=self.adversarial_mode),
                grid=(pl.cdiv(B, tb),),
                in_specs=[pl.BlockSpec((1, T), lambda i: (0, 0)),      # resident etat
                          pl.BlockSpec((tb, T), lambda i: (i, 0))],    # uniform noise
                out_specs=pl.BlockSpec((tb, T), lambda i: (i, 0)),
                out_shape=jax.ShapeDtypeStruct((B, T), jnp.float32),
                compiler_params=pltpu.CompilerParams(
                    dimension_semantics=("parallel",),
                    vmem_limit_bytes=_VMEM_LIMIT_BYTES),
            ))
            self._concrete_calls[B] = call
        return call

    def concrete_sample(self, batch_size, seed=0):
        u = jax.random.uniform(jax.random.PRNGKey(seed),
                               (batch_size, self.T), dtype=jnp.float32)
        alpha = self._get_concrete_call(batch_size)(self.etat, u)
        return alpha.reshape(batch_size, 1, self.T)    # (B, 1, T) like PyTorch

    # TODO(synk): reinmax_sample requires the external `reinmax` op; hard_sample
    # (in-place bernoulli under no_grad) is trivially done with jax.random outside
    # a kernel and is not ported here.


# ----------------------------------------------------------------------------
# Pure-JAX reference (for correctness check).
# ----------------------------------------------------------------------------
def _ref_stats(etat, log_C, use_budget):
    lse = jax.scipy.special.logsumexp(etat, axis=-1, keepdims=True)
    eta = jax.nn.softmax(etat, axis=-1)
    log_eta = jax.nn.log_softmax(etat, axis=-1)
    gammat = etat + log_C - lse if use_budget else etat
    return (eta, log_eta, jax.nn.sigmoid(gammat),
            jax.nn.log_sigmoid(gammat), jax.nn.log_sigmoid(-gammat))


if __name__ == "__main__":
    T = 128          # timesteps_per_trace
    B = 8            # batch size

    mech = SelectionMechanismPallas(timesteps_per_trace=T, gamma_bar=0.5,
                                    adversarial_mode=True, relaxation_temp=1.0,
                                    use_budget=True, seed=0)

    # distribution statistics (explicit getters)
    s = mech.stats()
    jax.block_until_ready(s["gamma"])
    ref = _ref_stats(mech.etat, mech.log_C, True)
    for name, r in zip(["eta", "log_eta", "gamma", "log_gamma", "log_1mgamma"], ref):
        assert jnp.allclose(s[name], r, atol=1e-5, rtol=1e-5), f"mismatch in {name}"

    # log_pmf on a hard alpha sample (B, 1, T), fused kernel
    key = jax.random.PRNGKey(0)
    k1, _ = jax.random.split(key)
    alpha_hard = (jax.random.uniform(k1, (B, 1, T)) < 0.5).astype(jnp.float32)
    lp = mech.log_pmf(alpha_hard)
    jax.block_until_ready(lp)
    lp_ref = jnp.sum(alpha_hard.reshape(B, T) * ref[3]
                     + (1 - alpha_hard.reshape(B, T)) * ref[4], axis=-1)
    assert lp.shape == (B,)
    assert jnp.allclose(lp, lp_ref, atol=1e-4, rtol=1e-4)

    # second call hits the cached jitted callable (no rebuild)
    lp2 = mech.log_pmf(alpha_hard)
    jax.block_until_ready(lp2)
    assert jnp.allclose(lp2, lp, atol=1e-6)

    # concrete (relaxed) sample, noise streamed in from the wrapper
    alpha_soft = mech.concrete_sample(B, seed=123)
    jax.block_until_ready(alpha_soft)
    assert alpha_soft.shape == (B, 1, T)
    assert bool(jnp.all(jnp.isfinite(alpha_soft)))
    assert bool(jnp.all((alpha_soft >= 0.0) & (alpha_soft <= 1.0)))

    # determinism for a fixed seed
    alpha_soft2 = mech.concrete_sample(B, seed=123)
    jax.block_until_ready(alpha_soft2)
    assert jnp.allclose(alpha_soft, alpha_soft2)

    # numeric check against the pure-JAX concrete-sample formula (same noise)
    u_ref = jnp.clip(jax.random.uniform(jax.random.PRNGKey(123), (B, T),
                                        dtype=jnp.float32), 1e-6, 1.0 - 1e-6)
    z_ref = ref[3] - ref[4] + jnp.log(u_ref) - jnp.log(1.0 - u_ref)
    alpha_ref = 1.0 - jax.nn.sigmoid(z_ref / mech.relaxation_temp)
    assert jnp.allclose(alpha_soft.reshape(B, T), alpha_ref, atol=1e-5, rtol=1e-5)

    print("KERNEL_OK")
</pallas_src>

<mosaic_0001>
module attributes {stable_mosaic.version = 11 : i64} {
  func.func @_stats_kernel(%arg0: memref<1x128xf32, #tpu.memory_space<vmem>>, %arg1: memref<1x128xf32, #tpu.memory_space<vmem>>, %arg2: memref<1x128xf32, #tpu.memory_space<vmem>>, %arg3: memref<1x128xf32, #tpu.memory_space<vmem>>, %arg4: memref<1x128xf32, #tpu.memory_space<vmem>>, %arg5: memref<1x128xf32, #tpu.memory_space<vmem>>) attributes {dimension_semantics = [], scalar_prefetch = 0 : i64, scratch_operands = 0 : i64, tpu.core_type = #tpu.core_type<tc>} {
    %c0 = arith.constant 0 : index
    %c0_0 = arith.constant 0 : index
    %0 = vector.load %arg0[%c0, %c0_0] : memref<1x128xf32, #tpu.memory_space<vmem>>, vector<1x128xf32>
    %cst = arith.constant dense<0xFF800000> : vector<1xf32>
    %1 = vector.multi_reduction <maximumf>, %0, %cst [1] : vector<1x128xf32> to vector<1xf32>
    %2 = vector.shape_cast %1 : vector<1xf32> to vector<1x1xf32>
    %3 = vector.broadcast %2 : vector<1x1xf32> to vector<1x128xf32>
    %4 = arith.subf %0, %3 : vector<1x128xf32>
    %5 = math.exp %4 : vector<1x128xf32>
    %cst_1 = arith.constant dense<0.000000e+00> : vector<1xf32>
    %6 = vector.multi_reduction <add>, %5, %cst_1 [1] : vector<1x128xf32> to vector<1xf32>
    %7 = vector.shape_cast %6 : vector<1xf32> to vector<1x1xf32>
    %8 = math.log %7 : vector<1x1xf32>
    %9 = arith.addf %2, %8 : vector<1x1xf32>
    %10 = vector.broadcast %7 : vector<1x1xf32> to vector<1x128xf32>
    %11 = arith.divf %5, %10 : vector<1x128xf32>
    %c0_2 = arith.constant 0 : index
    %c0_3 = arith.constant 0 : index
    %12 = vector.load %arg1[%c0_2, %c0_3] : memref<1x128xf32, #tpu.memory_space<vmem>>, vector<1x128xf32>
    tpu.vector_store %arg1[%c0_2, %c0_3], %11 {strides = array<i32>} : memref<1x128xf32, #tpu.memory_space<vmem>>, vector<1x128xf32>,
    %13 = vector.broadcast %9 : vector<1x1xf32> to vector<1x128xf32>
    %14 = arith.subf %0, %13 : vector<1x128xf32>
    %c0_4 = arith.constant 0 : index
    %c0_5 = arith.constant 0 : index
    %15 = vector.load %arg2[%c0_4, %c0_5] : memref<1x128xf32, #tpu.memory_space<vmem>>, vector<1x128xf32>
    tpu.vector_store %arg2[%c0_4, %c0_5], %14 {strides = array<i32>} : memref<1x128xf32, #tpu.memory_space<vmem>>, vector<1x128xf32>,
    %cst_6 = arith.constant 4.85203028 : f32
    %16 = vector.broadcast %cst_6 : f32 to vector<1x128xf32>
    %17 = arith.addf %0, %16 : vector<1x128xf32>
    %18 = vector.broadcast %9 : vector<1x1xf32> to vector<1x128xf32>
    %19 = arith.subf %17, %18 : vector<1x128xf32>
    %20 = arith.negf %19 : vector<1x128xf32>
    %21 = math.exp %20 : vector<1x128xf32>
    %cst_7 = arith.constant 1.000000e+00 : f32
    %22 = vector.broadcast %cst_7 : f32 to vector<1x128xf32>
    %23 = arith.addf %22, %21 : vector<1x128xf32>
    %24 = arith.divf %22, %23 : vector<1x128xf32>
    %c0_8 = arith.constant 0 : index
    %c0_9 = arith.constant 0 : index
    %25 = vector.load %arg3[%c0_8, %c0_9] : memref<1x128xf32, #tpu.memory_space<vmem>>, vector<1x128xf32>
    tpu.vector_store %arg3[%c0_8, %c0_9], %24 {strides = array<i32>} : memref<1x128xf32, #tpu.memory_space<vmem>>, vector<1x128xf32>,
    %26 = math.absf %19 : vector<1x128xf32>
    %cst_10 = arith.constant 0.000000e+00 : f32
    %27 = vector.broadcast %cst_10 : f32 to vector<1x128xf32>
    %28 = arith.subf %27, %26 : vector<1x128xf32>
    %29 = math.exp %28 : vector<1x128xf32>
    %30 = math.log1p %29 : vector<1x128xf32>
    %cst_11 = arith.constant 0.000000e+00 : f32
    %31 = vector.broadcast %cst_11 : f32 to vector<1x128xf32>
    %32 = arith.subf %31, %30 : vector<1x128xf32>
    %cst_12 = arith.constant 0.000000e+00 : f32
    %33 = vector.broadcast %cst_12 : f32 to vector<1x128xf32>
    %34 = arith.minimumf %19, %33 : vector<1x128xf32>
    %35 = arith.addf %34, %32 : vector<1x128xf32>
    %c0_13 = arith.constant 0 : index
    %c0_14 = arith.constant 0 : index
    %36 = vector.load %arg4[%c0_13, %c0_14] : memref<1x128xf32, #tpu.memory_space<vmem>>, vector<1x128xf32>
    tpu.vector_store %arg4[%c0_13, %c0_14], %35 {strides = array<i32>} : memref<1x128xf32, #tpu.memory_space<vmem>>, vector<1x128xf32>,
    %cst_15 = arith.constant 0.000000e+00 : f32
    %37 = vector.broadcast %cst_15 : f32 to vector<1x128xf32>
    %38 = arith.subf %37, %19 : vector<1x128xf32>
    %cst_16 = arith.constant 0.000000e+00 : f32
    %39 = vector.broadcast %cst_16 : f32 to vector<1x128xf32>
    %40 = arith.minimumf %38, %39 : vector<1x128xf32>
    %41 = arith.addf %40, %32 : vector<1x128xf32>
    %c0_17 = arith.constant 0 : index
    %c0_18 = arith.constant 0 : index
    %42 = vector.load %arg5[%c0_17, %c0_18] : memref<1x128xf32, #tpu.memory_space<vmem>>, vector<1x128xf32>
    tpu.vector_store %arg5[%c0_17, %c0_18], %41 {strides = array<i32>} : memref<1x128xf32, #tpu.memory_space<vmem>>, vector<1x128xf32>,
    return
  }
}

</mosaic_0001>

<bundles_post_ra>
// kernel: tpu_custom_call.1
= control target key start
LH: loop header
LB: loop body
LE: loop exit
PB: predicated region body
PF: predicated region fallthrough
CT: control target
= control target key end

     0   :  { %11 = vsyncpa [#allocation3], 0  ;;  %s437_s0 = inlined_call_operand.hbm [shape: f32[1,128], index: 0, kind: input, shape index: {}]   ;;  %s438_s1 = inlined_call_operand.hbm [shape: f32[1,128], index: 1, kind: output, shape index: {0}]   ;;  %s439_s2 = inlined_call_operand.hbm [shape: f32[1,128], index: 2, kind: output, shape index: {1}]   ;;  %s440_s3 = inlined_call_operand.hbm [shape: f32[1,128], index: 3, kind: output, shape index: {2}]   ;;  %s441_s4 = inlined_call_operand.hbm [shape: f32[1,128], index: 4, kind: output, shape index: {3}]   ;;  %s442_s5 = inlined_call_operand.hbm [shape: f32[1,128], index: 5, kind: output, shape index: {4}]  }
   0x1   :  { %12 = vsyncpa [#allocation4], 0 }
   0x2   :  { %13 = vsyncpa [#allocation7], 0 }
   0x3   :  { %14 = vsyncpa [#allocation10], 0  ;;  %s307_s18 = smov [#allocation2]   ;;  %s167_s22 = scalar_lea.hbm %s437_s0, 16 }
   0x4   :  { %s21_s19 = sshll.u32 %s307_s18, 4  ;;  %p168_p0 = scmp.ne.s32.totalorder %s437_s0, %s167_s22  ;;  %s22_s19 = int_to_ptr.vmem [resolvable:$true] %s21_s19 }
   0x5   :  { %p171_p1 = scmp.lt.u32.totalorder %s167_s22, %s437_s0 }
   0x7   :  { %p173_p2 = pnand %p171_p1, %p168_p0 }
   0x9   :  { %176 = shalt.err (!%p173_p2)
}
   0xa   :  { %s177_s27 = scalar_lea.vmem %s22_s19, 16  ;;  %s181_s28 = scalar_lea.vmem %s22_s19, 32 }
   0xb   :  { %p178_p3 = scmp.ne.s32.totalorder %s22_s19, %s177_s27  ;;  %p182_p4 = scmp.lt.s32.totalorder %s22_s19, %s22_s19 }
   0xc   :  { %p183_p5 = scmp.lt.s32.totalorder %s181_s28, %s177_s27 }
   0xe   :  { %p184_p6 = por %p183_p5, %p182_p4 }
  0x10   :  { %p185_p7 = pnand %p184_p6, %p178_p3 }
  0x12   :  { %188 = shalt.err (!%p185_p7)
}
  0x13   :  { %24 = dma.hbm_to_vmem [thread:$0]  %s437_s0, 16, %s22_s19, [#allocation3]  }
  0x14   :  { %299 = dma.done.wait [#allocation3], 16  }
  0x15   :  { %300 = vsyncadd [#allocation3], 4294967280  ;;  %vm29_vm0 = vcmask 1040384   ;;  %v28_v0 = vld [vmem:[#allocation2] sm:$0x1]  ;;  %s308_s6 = smov [#allocation5]  }
  0x16   :  { %v30_v1 = vsel %vm29_vm0, %v28_v0, -inf  ;;  %s83_s7 = sshll.u32 %s308_s6, 4  ;;  %v47_v10 = vadd.f32 4.8520303, %v28_v0  ;;  %s309_s0 = smov [#allocation6]   ;;  %s84_s7 = int_to_ptr.vmem [resolvable:$true] %s83_s7 }
  0x17   :  { %31 = vmax.xlane.f32.xlu0 %v30_v1  ;;  %s93_s8 = sshll.u32 %s309_s0, 4  ;;  %s189_s9 = scalar_lea.vmem %s84_s7, 16  ;;  %s355_s8 = int_to_ptr.vmem [resolvable:$true] %s93_s8 }
  0x18   :  { %p190_p8 = scmp.ne.s32.totalorder %s84_s7, %s189_s9  ;;  %s193_s10 = scalar_lea.vmem %s84_s7, 32 }
  0x19   :  { %p194_p9 = scmp.lt.s32.totalorder %s84_s7, %s84_s7  ;;  %p195_p10 = scmp.lt.s32.totalorder %s193_s10, %s189_s9 }
  0x1b   :  { %p196_p11 = por %p195_p10, %p194_p9 }
  0x1d   :  { %p197_p12 = pnand %p196_p11, %p190_p8 }
  0xa4   :  { %v32_v2 = vpop.xlane.xlu0 %31 }
  0xa5   :  { %v33_v3 = vsub.f32 %v28_v0, %v32_v2 }
  0xa7   :  { %v34_v4 = vmul.f32 1.442695, %v33_v3 }
  0xa9   :  { %153 = vpow2.f32 %v34_v4 }
  0xb3   :  { %v154_v5 = vpop.eup %153 }
  0xb4   :  { %v36_v6 = vsel %vm29_vm0, %v154_v5, 0.0 }
  0xb5   :  { %37 = vadd.xlane.f32.xlu0 %v36_v6 }
 0x142   :  { %v38_v7 = vpop.xlane.xlu0 %37 }
 0x143   :  { %155 = vlog2.f32 %v38_v7 }
 0x144   :  { %157 = vrcp.f32 %v38_v7 }
 0x14d   :  { %v156_v8 = vpop.eup %155 }
 0x14e   :  { %v158_v9 = vpop.eup %157  ;;  %v40_v11 = vmul.f32 0.6931472, %v156_v8 }
 0x14f   :  { %v43_v12 = vmul.f32 %v158_v9, %v154_v5 }
 0x150   :  { %v41_v13 = vadd.f32 %v40_v11, %v32_v2 }
 0x151   :  { %44 = vst [vmem:[#allocation5] sm:$0x1] %v43_v12 }
 0x152   :  { %v357_v14 = vsub.f32 %v47_v10, %v41_v13  ;;  %v45_v15 = vsub.f32 %v28_v0, %v41_v13 }
 0x153   :  { %200 = shalt.err (!%p197_p12)
}
 0x154   :  { %s201_s13 = scalar_lea.hbm %s438_s1, 16 }
 0x155   :  { %p202_p13 = scmp.ne.s32.totalorder %s438_s1, %s201_s13  ;;  %p205_p0 = scmp.lt.u32.totalorder %s201_s13, %s438_s1 }
 0x157   :  { %p207_p1 = pnand %p205_p0, %p202_p13 }
 0x159   :  { %210 = shalt.err (!%p207_p1)
}
 0x15a   :  { %86 = dma.vmem_to_hbm [thread:$0]  %s84_s7, 16, %s438_s1, [#allocation4]   ;;  %v146_v16 = vmul.f32 -1.442695, %v357_v14  ;;  %v56_v17 = vand.u32 2147483647, %v357_v14 }
 0x15b   :  { %46 = vst [vmem:[#allocation6] sm:$0x1] %v45_v15  ;;  %s211_s20 = scalar_lea.vmem %s355_s8, 16  ;;  %s215_s21 = scalar_lea.vmem %s355_s8, 32 }
 0x15c   :  { %p212_p2 = scmp.ne.s32.totalorder %s355_s8, %s211_s20  ;;  %p216_p3 = scmp.lt.s32.totalorder %s355_s8, %s355_s8 }
 0x15d   :  { %p217_p4 = scmp.lt.s32.totalorder %s215_s21, %s211_s20 }
 0x15f   :  { %p218_p5 = por %p217_p4, %p216_p3 }
 0x161   :  { %p219_p6 = pnand %p218_p5, %p212_p2 }
 0x163   :  { %222 = shalt.err (!%p219_p6)
}
 0x164   :  { %s223_s24 = scalar_lea.hbm %s439_s2, 16 }
 0x165   :  { %p224_p7 = scmp.ne.s32.totalorder %s439_s2, %s223_s24  ;;  %p227_p8 = scmp.lt.u32.totalorder %s223_s24, %s439_s2 }
 0x167   :  { %p229_p9 = pnand %p227_p8, %p224_p7 }
 0x169   :  { %232 = shalt.err (!%p229_p9)
}
 0x16a   :  { %96 = dma.vmem_to_hbm [thread:$0]  %s355_s8, 16, %s439_s2, [#allocation7]   ;;  %159 = vpow2.f32 %v146_v16  ;;  %v57_v18 = vsub.f32 0.0, %v56_v17 }
 0x16b   :  { %s310_s30 = smov [#allocation8]  }
 0x16c   :  { %v58_v19 = vmul.f32 1.442695, %v57_v18  ;;  %s103_s6 = sshll.u32 %s310_s30, 4  ;;  %s104_s6 = int_to_ptr.vmem [resolvable:$true] %s103_s6 }
 0x16d   :  { %s233_s7 = scalar_lea.vmem %s104_s6, 16  ;;  %s237_s2 = scalar_lea.vmem %s104_s6, 32 }
 0x16e   :  { %161 = vpow2.f32 %v58_v19  ;;  %p234_p10 = scmp.ne.s32.totalorder %s104_s6, %s233_s7  ;;  %p238_p11 = scmp.lt.s32.totalorder %s104_s6, %s104_s6 }
 0x16f   :  { %p239_p12 = scmp.lt.s32.totalorder %s237_s2, %s233_s7 }
 0x171   :  { %p240_p13 = por %p239_p12, %p238_p11 }
 0x173   :  { %p241_p0 = pnand %p240_p13, %p234_p10 }
 0x174   :  { %v160_v20 = vpop.eup %159 }
 0x175   :  { %v52_v21 = vadd.f32 1.0, %v160_v20 }
 0x177   :  { %163 = vrcp.f32 %v52_v21 }
 0x178   :  { %v162_v22 = vpop.eup %161 }
 0x179   :  { %v60_v23 = vadd.f32 1.0, %v162_v22  ;;  %v63_v24 = vmul.f32 -0.5, %v162_v22  ;;  %v66_v27 = vand.u32 2147483647, %v162_v22 }
 0x17b   :  { %165 = vlog2.f32 %v60_v23  ;;  %v64_v26 = vadd.f32 1.0, %v63_v24 }
 0x181   :  { %v164_v25 = vpop.eup %163 }
 0x182   :  { %55 = vst [vmem:[#allocation8] sm:$0x1] %v164_v25 }
 0x183   :  { %244 = shalt.err (!%p241_p0)
}
 0x184   :  { %s245_s9 = scalar_lea.hbm %s440_s3, 16 }
 0x185   :  { %p246_p1 = scmp.ne.s32.totalorder %s440_s3, %s245_s9  ;;  %p249_p2 = scmp.lt.u32.totalorder %s245_s9, %s440_s3 }
 0x187   :  { %p251_p3 = pnand %p249_p2, %p246_p1 }
 0x189   :  { %254 = shalt.err (!%p251_p3)
}
 0x18a   :  { %106 = dma.vmem_to_hbm [thread:$0]  %s104_s6, 16, %s440_s3, [#allocation7]   ;;  %v166_v28 = vpop.eup %165  ;;  %v73_v29 = vsub.f32 0.0, %v357_v14  ;;  %v65_v31 = vmul.f32 %v162_v22, %v64_v26  ;;  %vm67_vm1 = vcmp.lt.f32.partialorder %v66_v27, 0.0004427343  ;;  %v70_v34 = vmin.f32 %v357_v14, 0.0 }
 0x18b   :  { %v62_v30 = vmul.f32 0.6931472, %v166_v28  ;;  %s311_s16 = smov [#allocation9]   ;;  %s312_s18 = smov [#allocation11]  }
 0x18c   :  { %s113_s17 = sshll.u32 %s311_s16, 4  ;;  %v74_v35 = vmin.f32 %v73_v29, 0.0  ;;  %s123_s19 = sshll.u32 %s312_s18, 4  ;;  %s114_s17 = int_to_ptr.vmem [resolvable:$true] %s113_s17  ;;  %s405_s19 = int_to_ptr.vmem [resolvable:$true] %s123_s19 }
 0x18d   :  { %v68_v32 = vsel %vm67_vm1, %v65_v31, %v62_v30  ;;  %s255_s3 = scalar_lea.vmem %s114_s17, 16  ;;  %s259_s20 = scalar_lea.vmem %s114_s17, 32 }
 0x18e   :  { %v69_v33 = vsub.f32 0.0, %v68_v32  ;;  %p256_p4 = scmp.ne.s32.totalorder %s114_s17, %s255_s3  ;;  %p260_p5 = scmp.lt.s32.totalorder %s114_s17, %s114_s17 }
 0x18f   :  { %p261_p6 = scmp.lt.s32.totalorder %s259_s20, %s255_s3 }
 0x190   :  { %v71_v36 = vadd.f32 %v70_v34, %v69_v33  ;;  %v75_v37 = vadd.f32 %v74_v35, %v69_v33 }
 0x191   :  { %p262_p7 = por %p261_p6, %p260_p5 }
 0x192   :  { %72 = vst [vmem:[#allocation9] sm:$0x1] %v71_v36  ;;  %76 = vst [vmem:[#allocation11] sm:$0x1] %v75_v37 }
 0x193   :  { %p263_p8 = pnand %p262_p7, %p256_p4 }
 0x195   :  { %266 = shalt.err (!%p263_p8)
}
 0x196   :  { %s267_s23 = scalar_lea.hbm %s441_s4, 16 }
 0x197   :  { %p268_p9 = scmp.ne.s32.totalorder %s441_s4, %s267_s23  ;;  %p271_p10 = scmp.lt.u32.totalorder %s267_s23, %s441_s4 }
 0x199   :  { %p273_p11 = pnand %p271_p10, %p268_p9 }
 0x19b   :  { %276 = shalt.err (!%p273_p11)
}
 0x19c   :  { %116 = dma.vmem_to_hbm [thread:$0]  %s114_s17, 16, %s441_s4, [#allocation10]  }
 0x19d   :  { %s277_s29 = scalar_lea.vmem %s405_s19, 16  ;;  %s281_s30 = scalar_lea.vmem %s405_s19, 32 }
 0x19e   :  { %p278_p12 = scmp.ne.s32.totalorder %s405_s19, %s277_s29  ;;  %p282_p13 = scmp.lt.s32.totalorder %s405_s19, %s405_s19 }
 0x19f   :  { %p283_p0 = scmp.lt.s32.totalorder %s281_s30, %s277_s29 }
 0x1a1   :  { %p284_p1 = por %p283_p0, %p282_p13 }
 0x1a3   :  { %p285_p2 = pnand %p284_p1, %p278_p12 }
 0x1a5   :  { %288 = shalt.err (!%p285_p2)
}
 0x1a6   :  { %s289_s2 = scalar_lea.hbm %s442_s5, 16 }
 0x1a7   :  { %p290_p3 = scmp.ne.s32.totalorder %s442_s5, %s289_s2  ;;  %p293_p4 = scmp.lt.u32.totalorder %s289_s2, %s442_s5 }
 0x1a9   :  { %p295_p5 = pnand %p293_p4, %p290_p3 }
 0x1ab   :  { %298 = shalt.err (!%p295_p5)
}
 0x1ac   :  { %126 = dma.vmem_to_hbm [thread:$0]  %s405_s19, 16, %s442_s5, [#allocation10]  }
 0x1ad   :  { %301 = dma.done.wait [#allocation4], 16  }
 0x1ae   :  { %302 = vsyncadd [#allocation4], 4294967280 }
 0x1af   :  { %303 = dma.done.wait [#allocation7], 32  }
 0x1b0   :  { %304 = vsyncadd [#allocation7], 4294967264 }
 0x1b1   :  { %305 = dma.done.wait [#allocation10], 32  }
 0x1b2   :  { %306 = vsyncadd [#allocation10], 4294967264 }
 0x1b3   :  { %142 = vsyncpa [#allocation3], 1 }
 0x1b4   :  { %143 = vsyncpa [#allocation4], 1 }
 0x1b5   :  { %144 = vsyncpa [#allocation7], 1 }
 0x1b6   :  { %145 = vsyncpa [#allocation10], 1 }

</bundles_post_ra>
